<compile_context>
chip_gen: v5e
topology: v5e:2x2
jax: 0.10.0
libtpu: 0.0.40
codegen_flags: <defaults>
</compile_context>

<pallas_src>
import functools
import math

import jax
import jax.numpy as jnp
from jax import lax
from jax.experimental import pallas as pl
from jax.experimental.pallas import tpu as pltpu


def _lora_linear_kernel(*refs, has_bias):
    if has_bias:
        x_ref, w_ref, ax_ref, bt_ref, bias_ref, o_ref, acc_ref = refs
    else:
        x_ref, w_ref, ax_ref, bt_ref, o_ref, acc_ref = refs
        bias_ref = None

    k = pl.program_id(2)
    nk = pl.num_programs(2)

    @pl.when(k == 0)
    def _():
        acc_ref[...] = jnp.zeros_like(acc_ref)

    # Base partial sum: x_blk (tm,tk) . W0_blk (tn,tk), contracted on K
    # (== x @ W0^T, no wrapper-side weight transpose).
    acc_ref[...] += lax.dot_general(
        x_ref[...], w_ref[...], (((1,), (1,)), ((), ())),
        preferred_element_type=jnp.float32)

    @pl.when(k == nk - 1)
    def _():
        # LoRA up-projection on the precomputed scaled (tm, r) intermediate;
        # B^T block is (r, tn) -> canonical lane-dense MXU contraction.
        out = acc_ref[...] + jnp.dot(
            ax_ref[...], bt_ref[...], preferred_element_type=jnp.float32)
        if has_bias:
            out = out + bias_ref[...].astype(jnp.float32)
        o_ref[...] = out.astype(o_ref.dtype)


def _aligned_divisor(dim, target, align):
    """Largest multiple of `align` dividing `dim`, <= min(dim, target); 0 if none."""
    best = 0
    t = align
    upper = min(dim, target)
    while t <= upper:
        if dim % t == 0:
            best = t
        t += align
    return best


def lora_linear(x, w0, lora_a, lora_b, *, alpha, rank, bias=None,
                tm=512, tn=256, tk=512):
    """LoRALinear forward.

    Args:
      x:      (..., in_dim)
      w0:     (out_dim, in_dim)  base linear weight (PyTorch layout)
      lora_a: (rank, in_dim)
      lora_b: (out_dim, rank)
      alpha:  scaling numerator
      rank:   LoRA rank (scaling denominator)
      bias:   optional (out_dim,) base-linear bias (use_bias=True path)
      tm/tn/tk: M / out_dim / in_dim tile sizes (auto-clamped to legal values)
    Returns:
      (..., out_dim) in x.dtype
    """
    in_dim = x.shape[-1]
    out_dim = w0.shape[0]
    r = lora_a.shape[0]
    lead = x.shape[:-1]
    m = int(math.prod(lead)) if lead else 1
    out_dtype = x.dtype

    if m == 0:
        return jnp.zeros((*lead, out_dim), out_dtype)

    x2 = x.reshape(m, in_dim)
    scale = float(alpha) / float(rank)

    # --- LoRA down-projection hoisted out of the K loop ---------------------
    # ax = scale * (x @ A^T): one (M, rank) matmul for the whole call.
    ax = lax.dot_general(x2, lora_a, (((1,), (1,)), ((), ())),
                         preferred_element_type=jnp.float32)
    ax = (scale * ax).astype(out_dtype)

    # lora_b pre-transposed to (rank, out_dim): lane-dense epilogue operand.
    b_t = jnp.transpose(lora_b)

    # --- tile selection (respect the (8,128) block constraints) -------------
    # M tile: multiple of 8 (ragged last tile masked on write) or full M.
    tm = m if m <= tm else max(8, (tm // 8) * 8)

    # N tile: keep MXU-aligned; ragged last N tile is masked on write
    # (no tn = out_dim fallback for large, non-aligned out_dims).
    if out_dim <= tn:
        tn = out_dim
    else:
        tn = max(128, (tn // 128) * 128)

    # K tile: reduction axis -> must divide the (possibly padded) K exactly.
    in_dim_p = in_dim
    tk_sel = _aligned_divisor(in_dim, tk, 256) or _aligned_divisor(in_dim, tk, 128)
    if tk_sel:
        tk = tk_sel
    elif in_dim <= max(tk, 2048):
        tk = in_dim  # single full-extent K block; VMEM-safe at this size
    else:
        # Rare fallback for large non-128-aligned in_dim: zero-pad K in the
        # wrapper (zeros contribute nothing to the reduction).
        in_dim_p = pl.cdiv(in_dim, 128) * 128
        x2 = jnp.pad(x2, ((0, 0), (0, in_dim_p - in_dim)))
        w0 = jnp.pad(w0, ((0, 0), (0, in_dim_p - in_dim)))
        tk = _aligned_divisor(in_dim_p, tk, 128)

    num_m = pl.cdiv(m, tm)
    num_n = pl.cdiv(out_dim, tn)
    num_k = in_dim_p // tk

    has_bias = bias is not None

    in_specs = [
        pl.BlockSpec((tm, tk), lambda i, j, k: (i, k)),   # x
        pl.BlockSpec((tn, tk), lambda i, j, k: (j, k)),   # W0
        pl.BlockSpec((tm, r), lambda i, j, k: (i, 0)),    # ax = scale * x @ A^T
        pl.BlockSpec((r, tn), lambda i, j, k: (0, j)),    # B^T (rank, out_dim)
    ]
    args = [x2, w0, ax, b_t]
    if has_bias:
        in_specs.append(pl.BlockSpec((1, tn), lambda i, j, k: (0, j)))
        args.append(bias.reshape(1, out_dim))

    kernel = functools.partial(_lora_linear_kernel, has_bias=has_bias)

    itemsize = x2.dtype.itemsize
    flops = 2 * m * in_dim_p * out_dim + 2 * m * r * out_dim
    bytes_accessed = int(
        num_n * m * in_dim_p * itemsize                       # x re-read per N tile
        + num_m * out_dim * in_dim_p * w0.dtype.itemsize      # W0 re-read per M tile
        + num_n * num_k * m * r * ax.dtype.itemsize           # ax per (j, k)
        + num_m * num_k * r * out_dim * b_t.dtype.itemsize    # B^T per (i, k)
        + m * out_dim * itemsize)                             # output write

    out = pl.pallas_call(
        kernel,
        out_shape=jax.ShapeDtypeStruct((m, out_dim), out_dtype),
        grid_spec=pltpu.PrefetchScalarGridSpec(
            num_scalar_prefetch=0,
            grid=(num_m, num_n, num_k),
            in_specs=in_specs,
            out_specs=pl.BlockSpec((tm, tn), lambda i, j, k: (i, j)),
            scratch_shapes=[
                pltpu.VMEM((tm, tn), jnp.float32),   # base/out accumulator
            ],
        ),
        compiler_params=pltpu.CompilerParams(
            dimension_semantics=("parallel", "parallel", "arbitrary")),
        cost_estimate=pl.CostEstimate(
            flops=flops, transcendentals=0, bytes_accessed=bytes_accessed),
    )(*args)

    return out.reshape(*lead, out_dim)


# TODO(synk): dropout>0 (nn.Dropout before lora_a) and quantize_base/NF4 paths
# are not implemented; module defaults (dropout=0.0, quantize_base=False) are
# covered.  `disabled=True` simply skips the LoRA branch and is a host-level
# switch, not part of this kernel.


if __name__ == "__main__":
    key = jax.random.PRNGKey(0)

    def ref_fn(x, w0, a, b, alpha, rank, bias=None):
        out = x @ w0.T
        if bias is not None:
            out = out + bias
        return out + (alpha / rank) * ((x @ a.T) @ b.T)

    # ---- case 1: module-default small shapes, use_bias=False ---------------
    in_dim, out_dim, rank, alpha = 32, 32, 8, 16.0
    batch, seq = 2, 8
    k1, k2, k3, k4, k5 = jax.random.split(key, 5)
    bound = 1.0 / math.sqrt(in_dim)
    x = jax.random.normal(k1, (batch, seq, in_dim), jnp.float32)
    # Base linear: nn.Linear default init U(-1/sqrt(in_dim), +1/sqrt(in_dim))
    w0 = jax.random.uniform(k2, (out_dim, in_dim), jnp.float32, -bound, bound)
    # lora_a: kaiming_uniform_(a=sqrt(5)) -> U(-1/sqrt(in_dim), +1/sqrt(in_dim))
    lora_a = jax.random.uniform(k3, (rank, in_dim), jnp.float32, -bound, bound)
    # NOTE: torchtune zero-inits lora_b; small nonzero values here so the LoRA
    # path is actually exercised/verified.
    lora_b = 0.01 * jax.random.normal(k4, (out_dim, rank), jnp.float32)

    out = lora_linear(x, w0, lora_a, lora_b, alpha=alpha, rank=rank)
    out = jax.block_until_ready(out)
    ref = ref_fn(x, w0, lora_a, lora_b, alpha, rank)
    assert out.shape == (batch, seq, out_dim)
    assert jnp.allclose(out, ref, atol=1e-5, rtol=1e-5), "case1 mismatch"

    # ---- case 2: use_bias=True + multi-tile grid (M, N, K all tiled) -------
    in_dim2, out_dim2, rank2, alpha2 = 256, 256, 16, 32.0
    batch2, seq2 = 2, 128
    bound2 = 1.0 / math.sqrt(in_dim2)
    kk = jax.random.split(k5, 6)
    x2 = jax.random.normal(kk[0], (batch2, seq2, in_dim2), jnp.float32)
    w02 = jax.random.uniform(kk[1], (out_dim2, in_dim2), jnp.float32,
                             -bound2, bound2)
    a2 = jax.random.uniform(kk[2], (rank2, in_dim2), jnp.float32,
                            -bound2, bound2)
    b2 = 0.01 * jax.random.normal(kk[3], (out_dim2, rank2), jnp.float32)
    bias2 = jax.random.normal(kk[4], (out_dim2,), jnp.float32)

    out2 = lora_linear(x2, w02, a2, b2, alpha=alpha2, rank=rank2, bias=bias2,
                       tm=128, tn=128, tk=128)   # forces a 2x2x2 grid
    out2 = jax.block_until_ready(out2)
    ref2 = ref_fn(x2, w02, a2, b2, alpha2, rank2, bias2)
    assert out2.shape == (batch2, seq2, out_dim2)
    assert jnp.allclose(out2, ref2, atol=1e-4, rtol=1e-4), "case2 mismatch"

    # ---- case 3: ragged M and N tiles (write masking), use_bias=True -------
    in_dim3, out_dim3, rank3, alpha3 = 384, 320, 8, 16.0
    batch3, seq3 = 2, 100
    bound3 = 1.0 / math.sqrt(in_dim3)
    kk3 = jax.random.split(kk[5], 5)
    x3 = jax.random.normal(kk3[0], (batch3, seq3, in_dim3), jnp.float32)
    w03 = jax.random.uniform(kk3[1], (out_dim3, in_dim3), jnp.float32,
                             -bound3, bound3)
    a3 = jax.random.uniform(kk3[2], (rank3, in_dim3), jnp.float32,
                            -bound3, bound3)
    b3 = 0.01 * jax.random.normal(kk3[3], (out_dim3, rank3), jnp.float32)
    bias3 = jax.random.normal(kk3[4], (out_dim3,), jnp.float32)

    out3 = lora_linear(x3, w03, a3, b3, alpha=alpha3, rank=rank3, bias=bias3,
                       tm=128)   # M=200 -> ragged M tile; N=320 -> ragged N tile
    out3 = jax.block_until_ready(out3)
    ref3 = ref_fn(x3, w03, a3, b3, alpha3, rank3, bias3)
    assert out3.shape == (batch3, seq3, out_dim3)
    assert jnp.allclose(out3, ref3, atol=1e-4, rtol=1e-4), "case3 mismatch"

    print("KERNEL_OK")
</pallas_src>

<mosaic_0001>
module attributes {stable_mosaic.version = 11 : i64} {
  func.func @_lora_linear_kernel(%arg0: i32, %arg1: i32, %arg2: i32, %arg3: memref<16x32xf32, #tpu.memory_space<vmem>>, %arg4: memref<32x32xf32, #tpu.memory_space<vmem>>, %arg5: memref<16x8xf32, #tpu.memory_space<vmem>>, %arg6: memref<8x32xf32, #tpu.memory_space<vmem>>, %arg7: memref<16x32xf32, #tpu.memory_space<vmem>>, %arg8: memref<16x32xf32, #tpu.memory_space<vmem>>) attributes {dimension_semantics = [#tpu.dimension_semantics<parallel>, #tpu.dimension_semantics<parallel>, #tpu.dimension_semantics<arbitrary>], iteration_bounds = array<i64: 1, 1, 1>, scalar_prefetch = 0 : i64, scratch_operands = 1 : i64, tpu.core_type = #tpu.core_type<tc>, window_params = [{transform_indices = @transform_0, window_bounds = array<i64: 16, 32>}, {transform_indices = @transform_1, window_bounds = array<i64: 32, 32>}, {transform_indices = @transform_2, window_bounds = array<i64: 16, 8>}, {transform_indices = @transform_3, window_bounds = array<i64: 8, 32>}, {transform_indices = @transform_4, window_bounds = array<i64: 16, 32>}]} {
    %c0_i32 = arith.constant 0 : i32
    %0 = arith.cmpi eq, %arg2, %c0_i32 : i32
    %1 = arith.extui %0 : i1 to i32
    %c0_i32_0 = arith.constant 0 : i32
    %2 = arith.cmpi ne, %1, %c0_i32_0 : i32
    scf.if %2 {
      %cst_10 = arith.constant 0.000000e+00 : f32
      %12 = vector.broadcast %cst_10 : f32 to vector<16x32xf32>
      %c0_11 = arith.constant 0 : index
      %c0_12 = arith.constant 0 : index
      %13 = vector.load %arg8[%c0_11, %c0_12] : memref<16x32xf32, #tpu.memory_space<vmem>>, vector<16x32xf32>
      tpu.vector_store %arg8[%c0_11, %c0_12], %12 {strides = array<i32>} : memref<16x32xf32, #tpu.memory_space<vmem>>, vector<16x32xf32>,
    } else {
    }
    %c0 = arith.constant 0 : index
    %c0_1 = arith.constant 0 : index
    %3 = vector.load %arg8[%c0, %c0_1] : memref<16x32xf32, #tpu.memory_space<vmem>>, vector<16x32xf32>
    %c0_2 = arith.constant 0 : index
    %c0_3 = arith.constant 0 : index
    %4 = vector.load %arg3[%c0_2, %c0_3] : memref<16x32xf32, #tpu.memory_space<vmem>>, vector<16x32xf32>
    %c0_4 = arith.constant 0 : index
    %c0_5 = arith.constant 0 : index
    %5 = vector.load %arg4[%c0_4, %c0_5] : memref<32x32xf32, #tpu.memory_space<vmem>>, vector<32x32xf32>
    %cst = arith.constant dense<0.000000e+00> : vector<16x32xf32>
    %6 = tpu.matmul %4, %5, %cst {dimension_numbers = #tpu.dot_dimension_numbers<[1], [1], [0], [0], [0, 0, 1, 0], [], []>} : vector<16x32xf32>, vector<32x32xf32>, vector<16x32xf32> -> vector<16x32xf32>
    %7 = arith.addf %3, %6 : vector<16x32xf32>
    %c0_6 = arith.constant 0 : index
    %c0_7 = arith.constant 0 : index
    %8 = vector.load %arg8[%c0_6, %c0_7] : memref<16x32xf32, #tpu.memory_space<vmem>>, vector<16x32xf32>
    tpu.vector_store %arg8[%c0_6, %c0_7], %7 {strides = array<i32>} : memref<16x32xf32, #tpu.memory_space<vmem>>, vector<16x32xf32>,
    %c0_i32_8 = arith.constant 0 : i32
    %9 = arith.cmpi eq, %arg2, %c0_i32_8 : i32
    %10 = arith.extui %9 : i1 to i32
    %c0_i32_9 = arith.constant 0 : i32
    %11 = arith.cmpi ne, %10, %c0_i32_9 : i32
    scf.if %11 {
      %c0_10 = arith.constant 0 : index
      %c0_11 = arith.constant 0 : index
      %12 = vector.load %arg8[%c0_10, %c0_11] : memref<16x32xf32, #tpu.memory_space<vmem>>, vector<16x32xf32>
      %c0_12 = arith.constant 0 : index
      %c0_13 = arith.constant 0 : index
      %13 = vector.load %arg5[%c0_12, %c0_13] : memref<16x8xf32, #tpu.memory_space<vmem>>, vector<16x8xf32>
      %c0_14 = arith.constant 0 : index
      %c0_15 = arith.constant 0 : index
      %14 = vector.load %arg6[%c0_14, %c0_15] : memref<8x32xf32, #tpu.memory_space<vmem>>, vector<8x32xf32>
      %cst_16 = arith.constant dense<0.000000e+00> : vector<16x32xf32>
      %15 = tpu.matmul %13, %14, %cst_16 {dimension_numbers = #tpu.dot_dimension_numbers<[1], [0], [0], [1], [0, 0, 1, 1], [], []>} : vector<16x8xf32>, vector<8x32xf32>, vector<16x32xf32> -> vector<16x32xf32>
      %16 = arith.addf %12, %15 : vector<16x32xf32>
      %c0_17 = arith.constant 0 : index
      %c0_18 = arith.constant 0 : index
      %17 = vector.load %arg7[%c0_17, %c0_18] : memref<16x32xf32, #tpu.memory_space<vmem>>, vector<16x32xf32>
      tpu.vector_store %arg7[%c0_17, %c0_18], %16 {strides = array<i32>} : memref<16x32xf32, #tpu.memory_space<vmem>>, vector<16x32xf32>,
    } else {
    }
    return
  }
  func.func @transform_0(%arg0: i32, %arg1: i32, %arg2: i32) -> (i32, i32) {
    %c0_i32 = arith.constant 0 : i32
    return %arg0, %arg2 : i32, i32
  }
  func.func @transform_1(%arg0: i32, %arg1: i32, %arg2: i32) -> (i32, i32) {
    %c0_i32 = arith.constant 0 : i32
    return %arg1, %arg2 : i32, i32
  }
  func.func @transform_2(%arg0: i32, %arg1: i32, %arg2: i32) -> (i32, i32) {
    %c0_i32 = arith.constant 0 : i32
    %c0_i32_0 = arith.constant 0 : i32
    return %arg0, %c0_i32 : i32, i32
  }
  func.func @transform_3(%arg0: i32, %arg1: i32, %arg2: i32) -> (i32, i32) {
    %c0_i32 = arith.constant 0 : i32
    %c0_i32_0 = arith.constant 0 : i32
    return %c0_i32, %arg1 : i32, i32
  }
  func.func @transform_4(%arg0: i32, %arg1: i32, %arg2: i32) -> (i32, i32) {
    %c0_i32 = arith.constant 0 : i32
    return %arg0, %arg1 : i32, i32
  }
}

</mosaic_0001>

<bundles_post_ra>
// kernel: tpu_custom_call.1
= control target key start
LH: loop header
LB: loop body
LE: loop exit
PB: predicated region body
PF: predicated region fallthrough
CT: control target
= control target key end

     0   :  { %9 = vsyncpa [#allocation4], 0  ;;  %s298_s0 = inlined_call_operand.vmem [shape: f32[16,32], index: 0, kind: input, shape index: {}]   ;;  %s299_s1 = inlined_call_operand.hbm [shape: f32[32,32], index: 1, kind: input, shape index: {}]   ;;  %s300_s2 = inlined_call_operand.vmem [shape: f32[16,8], index: 2, kind: input, shape index: {}]   ;;  %s301_s3 = inlined_call_operand.vmem [shape: f32[8,32], index: 3, kind: input, shape index: {}]   ;;  %s302_s4 = inlined_call_operand.hbm [shape: f32[16,32], index: 4, kind: output, shape index: {}]  }
   0x1   :  { %10 = vsyncpa [#allocation5], 0  ;;  %s17_s17 = sshll.u32 %s299_s1, 4  ;;  %s225_s18 = smov [#allocation3]   ;;  %s18_s17 = int_to_ptr.hbm [resolvable:$true] %s17_s17 }
   0x2   :  { %s19_s19 = sshll.u32 %s225_s18, 4  ;;  %s226_s20 = smov 128   ;;  %s20_s19 = int_to_ptr.vmem [resolvable:$true] %s19_s19 }
   0x3   :  { %s227_s21 = smov 8  }
   0x4   :  { %25 = dma.hbm_to_vmem [thread:$0]  %s18_s17, 512, %s20_s19, [#allocation4], %s226_s20, %s226_s20, %s227_s21  }
   0x5   :  { %221 = dma.done.wait [#allocation4], 512  }
   0x6   :  { %222 = vsyncadd [#allocation4], 4294966784  ;;  %vm38_vm0 = vcmask 261120   ;;  %v228_v0 = vmov 0.0   ;;  %v48_v1 = vld [vmem:[#allocation3 + $0x18] sm:$0xff]  ;;  %vm103_vm1 = vcmask 64512  }
   0x7   :  { %39 = vst.msk [vmem:[#allocation2] sm:$0xff] %vm38_vm0, %v228_v0  ;;  %156 = vmatpush.xpose.msk.msra.mxu0 %vm38_vm0, %v48_v1  ;;  %164 = vmatpush.xpose.msk.msra.mxu2 %vm38_vm0, %v48_v1  ;;  %v47_v2 = vld [vmem:[#allocation3 + $0x10] sm:$0xff]  ;;  %v46_v5 = vld [vmem:[#allocation3 + $0x8] sm:$0xff]  ;;  %v101_v6 = vld [vmem:[%s300_s2 + $0x8] sm:$0xff]  ;;  %s143_s6 = sshll.u32 %s302_s4, 4  ;;  %s144_s6 = int_to_ptr.hbm [resolvable:$true] %s143_s6 }
   0x8   :  { %40 = vst.msk [vmem:[#allocation2 + $0x8] sm:$0xff] %vm38_vm0, %v228_v0  ;;  %v102_v3 = vld [vmem:[%s301_s3] sm:$0xff]  ;;  %v45_v7 = vld [vmem:[#allocation3] sm:$0xff]  ;;  %v44_v9 = vld [vmem:[%s298_s0 + $0x8] sm:$0xff] }
   0x9   :  { %v100_v4 = vld [vmem:[%s300_s2] sm:$0xff]  ;;  %125 = vmatpush.msra.mxu1 %v102_v3 }
   0xa   :  { %162 = vmatmul.msk.f32.vlgmr.msra.gmra.mxu1 %vm103_vm1, %v100_v4  ;;  %v43_v8 = vld [vmem:[%s298_s0] sm:$0xff]  ;;  %s229_s0 = smov [#allocation6]  }
   0xb   :  { %157 = vmatpush.xpose.msk.msra.mxu0 %vm38_vm0, %v47_v2  ;;  %165 = vmatpush.xpose.msk.msra.mxu2 %vm38_vm0, %v47_v2  ;;  %s141_s2 = sshll.u32 %s229_s0, 4  ;;  %s142_s2 = int_to_ptr.vmem [resolvable:$true] %s141_s2 }
   0xe   :  { %v41_v10 = vld [vmem:[#allocation2] sm:$0xff] }
   0xf   :  { %158 = vmatpush.xpose.msk.msra.mxu0 %vm38_vm0, %v46_v5  ;;  %166 = vmatpush.xpose.msk.msra.mxu2 %vm38_vm0, %v46_v5  ;;  %v42_v13 = vld [vmem:[#allocation2 + $0x8] sm:$0xff] }
  0x12   :  { %163 = vmatmul.msk.f32.gmra.mxu1 %vm103_vm1, %v101_v6 }
  0x13   :  { %159 = vmatpush.xpose.msk.msra.mxu0 %vm38_vm0, %v45_v7  ;;  %167 = vmatpush.xpose.msk.msra.mxu2 %vm38_vm0, %v45_v7 }
  0x16   :  { %160 = vmatmul.msk.f32.vlgmr.msra.gmra.mxu0 %vm38_vm0, %v43_v8  ;;  %161 = vmatmul.msk.f32.vlgmr.msra.gmra.mxu2 %vm38_vm0, %v44_v9 }
  0x87   :  { %v127_v14 = vpop.f32.mrf.mxu1 }
  0x8f   :  { %v130_v19 = vpop.f32.mrf.mxu1 }
  0x93   :  { %v85_v11 = vpop.f32.mrf.mxu0 }
  0x94   :  { %v91_v12 = vadd.f32 %v85_v11, %v41_v10 }
  0x96   :  { %93 = vst.msk [vmem:[#allocation2] sm:$0xff] %vm38_vm0, %v91_v12 }
  0x99   :  { %v88_v15 = vpop.f32.mrf.mxu2 }
  0x9a   :  { %v92_v16 = vadd.f32 %v88_v15, %v42_v13 }
  0x9c   :  { %94 = vst.msk [vmem:[#allocation2 + $0x8] sm:$0xff] %vm38_vm0, %v92_v16 }
  0x9d   :  { %v98_v17 = vld [vmem:[#allocation2] sm:$0xff] }
  0x9e   :  { %v133_v18 = vadd.f32 %v127_v14, %v98_v17 }
  0xa0   :  { %135 = vst.msk [vmem:[#allocation6] sm:$0xff] %vm38_vm0, %v133_v18 }
  0xa3   :  { %v99_v20 = vld [vmem:[#allocation2 + $0x8] sm:$0xff] }
  0xa4   :  { %v134_v21 = vadd.f32 %v130_v19, %v99_v20 }
  0xa6   :  { %136 = vst.msk [vmem:[#allocation6 + $0x8] sm:$0xff] %vm38_vm0, %v134_v21 }
  0xa7   :  { %149 = dma.vmem_to_hbm [thread:$0]  %s142_s2, 256, %s144_s6, [#allocation5], %s226_s20, %s226_s20, %s227_s21  }
  0xa8   :  { %223 = dma.done.wait [#allocation5], 256  }
  0xa9   :  { %224 = vsyncadd [#allocation5], 4294967040 }
  0xaa   :  { %154 = vsyncpa [#allocation4], 1 }
  0xab   :  { %155 = vsyncpa [#allocation5], 1 }

</bundles_post_ra>
